<compile_context>
chip_gen: v6e
topology: v6e:2x2x1
jax: 0.10.0
libtpu: 0.0.40
codegen_flags: <defaults>
</compile_context>

<pallas_src>
import functools

import jax
import jax.numpy as jnp
from jax.experimental import pallas as pl
from jax.experimental.pallas import tpu as pltpu


def _pos_emb_kernel(x_ref, s_ref, phase_ref, out_ref, *, pack):
    # x_ref:     (TILE, pack)  f32   packed positions (pack per output row)
    # s_ref:     (pack, W)     f32   S[r, r*C + c] = freqs2[c], else 0
    # phase_ref: (1, W)        f32   [0]*H ++ [pi/2]*H, tiled `pack` times
    # out_ref:   (TILE, W)           W = pack * num_channels (lane-dense)
    x = x_ref[...]
    s = s_ref[...]
    # Exact unrolled expansion: outer[t, r*C + c] = x[t, r] * freqs2[c].
    outer = x[:, 0:1] * s[0:1, :]
    for r in range(1, pack):
        outer = outer + x[:, r:r + 1] * s[r:r + 1, :]
    # Single lane-dense transcendental pass; sin(t) == cos(t - pi/2).
    out_ref[...] = jnp.cos(outer - phase_ref[...]).astype(out_ref.dtype)


def positional_embedding(x, num_channels, max_positions=10000, endpoint=False,
                         out_tile_bytes=4 * 1024 * 1024, min_pallas_rows=2048):
    """x: (N,) array of positions. Returns (N, num_channels)."""
    assert num_channels % 2 == 0, "num_channels must be even"
    half = num_channels // 2
    denom = half - (1 if endpoint else 0)
    assert denom > 0, "endpoint=True requires num_channels > 2"

    n = x.shape[0]
    out_dtype = x.dtype

    freqs = jnp.arange(half, dtype=jnp.float32) / denom
    freqs = (1.0 / max_positions) ** freqs                         # (H,) f32

    # Tiny inputs: XLA fuses outer+cos/sin fine; skip kernel launch overhead.
    if n < min_pallas_rows:
        outer = x.astype(jnp.float32)[:, None] * freqs[None, :]
        return jnp.concatenate(
            [jnp.cos(outer), jnp.sin(outer)], axis=1).astype(out_dtype)

    # Lane packing factor: positions per 128-lane output row.
    if num_channels < 128 and 128 % num_channels == 0:
        pack = 128 // num_channels
    else:
        pack = 1
    w = pack * num_channels

    freqs2 = jnp.concatenate([freqs, freqs])                        # (C,)
    phase1 = jnp.concatenate(
        [jnp.zeros((half,), jnp.float32),
         jnp.full((half,), jnp.pi / 2, dtype=jnp.float32)])         # (C,)
    # Selection matrix: one nonzero per column -> exact products in-kernel.
    s_mat = jnp.kron(jnp.eye(pack, dtype=jnp.float32), freqs2[None, :])  # (pack, W)
    phase = jnp.tile(phase1, pack).reshape(1, w)                    # (1, W)

    # Stage positions in f32 (precision for bf16 inputs), pad only to `pack`.
    n_groups = pl.cdiv(n, pack)
    n_padded = n_groups * pack
    xf = x.astype(jnp.float32)
    if n_padded != n:
        xf = jnp.pad(xf, (0, n_padded - n))
    x2d = xf.reshape(n_groups, pack)

    # Byte-budget row tile (output dominates traffic); keep >=2 grid steps
    # when there is enough work so v7x can shard rows across both TCs.
    row_bytes = w * jnp.dtype(out_dtype).itemsize
    tn = max(8, (int(out_tile_bytes) // row_bytes) // 8 * 8)
    half_groups = (n_groups + 1) // 2
    tn = min(tn, max(8, ((half_groups + 7) // 8) * 8))
    grid = pl.cdiv(n_groups, tn)

    kernel = functools.partial(_pos_emb_kernel, pack=pack)

    out = pl.pallas_call(
        kernel,
        out_shape=jax.ShapeDtypeStruct((n_groups, w), out_dtype),
        grid_spec=pl.GridSpec(
            grid=(grid,),
            in_specs=[
                pl.BlockSpec((tn, pack), lambda i: (i, 0)),
                pl.BlockSpec((pack, w), lambda i: (0, 0)),
                pl.BlockSpec((1, w), lambda i: (0, 0)),
            ],
            out_specs=pl.BlockSpec((tn, w), lambda i: (i, 0)),
        ),
        compiler_params=pltpu.CompilerParams(
            dimension_semantics=("parallel",)),
        cost_estimate=pl.CostEstimate(
            flops=int(n_groups) * int(w) * (2 * pack),
            transcendentals=int(n_groups) * int(w),
            bytes_accessed=int(n_groups * pack * 4 + pack * w * 4 + w * 4
                               + n_groups * w * jnp.dtype(out_dtype).itemsize),
        ),
    )(x2d, s_mat, phase)

    out = out.reshape(n_padded, num_channels)
    if n_padded != n:
        out = out[:n]
    return out


def _reference(x, num_channels, max_positions=10000, endpoint=False):
    half = num_channels // 2
    freqs = jnp.arange(half, dtype=jnp.float32)
    freqs = freqs / (half - (1 if endpoint else 0))
    freqs = (1.0 / max_positions) ** freqs
    outer = x.astype(jnp.float32)[:, None] * freqs[None, :]
    return jnp.concatenate(
        [jnp.cos(outer), jnp.sin(outer)], axis=1).astype(x.dtype)


if __name__ == "__main__":
    NUM_CHANNELS = 32

    # 1) Small demo shape (typical timestep / noise-level embedding).
    #    pack = 128 // 32 = 4 positions per 128-lane output row.
    N = 8
    x = jax.random.uniform(jax.random.PRNGKey(0), (N,), dtype=jnp.float32) * 100.0
    out = positional_embedding(x, NUM_CHANNELS, min_pallas_rows=0)   # force Pallas
    out = jax.block_until_ready(out)
    ref = _reference(x, NUM_CHANNELS)
    assert out.shape == (N, NUM_CHANNELS), out.shape
    assert jnp.allclose(out, ref, atol=1e-4, rtol=1e-4), "mismatch (small N)"

    # 2) Larger N, non-multiple of the row tile: multi-step grid + edge block.
    N2 = 1000
    x2 = jax.random.uniform(jax.random.PRNGKey(1), (N2,), dtype=jnp.float32) * 100.0
    out2 = jax.block_until_ready(
        positional_embedding(x2, NUM_CHANNELS, min_pallas_rows=0))
    ref2 = _reference(x2, NUM_CHANNELS)
    assert out2.shape == (N2, NUM_CHANNELS), out2.shape
    assert jnp.allclose(out2, ref2, atol=1e-4, rtol=1e-4), "mismatch (tiled N)"

    # 3) N not a multiple of the pack factor: exercises pack padding + slice.
    N3 = 37
    x3 = jax.random.uniform(jax.random.PRNGKey(2), (N3,), dtype=jnp.float32) * 100.0
    out3 = jax.block_until_ready(
        positional_embedding(x3, NUM_CHANNELS, min_pallas_rows=0))
    ref3 = _reference(x3, NUM_CHANNELS)
    assert out3.shape == (N3, NUM_CHANNELS), out3.shape
    assert jnp.allclose(out3, ref3, atol=1e-4, rtol=1e-4), "mismatch (odd N)"

    # 4) Wide channel count (>=128): pack=1, already lane-dense path.
    N4, C4 = 64, 256
    x4 = jax.random.uniform(jax.random.PRNGKey(3), (N4,), dtype=jnp.float32) * 100.0
    out4 = jax.block_until_ready(
        positional_embedding(x4, C4, min_pallas_rows=0))
    ref4 = _reference(x4, C4)
    assert out4.shape == (N4, C4), out4.shape
    assert jnp.allclose(out4, ref4, atol=1e-4, rtol=1e-4), "mismatch (wide C)"

    print("KERNEL_OK")
</pallas_src>

<mosaic_0001>
module attributes {stable_mosaic.version = 11 : i64} {
  func.func @_pos_emb_kernel(%arg0: i32, %arg1: memref<8x4xf32, #tpu.memory_space<vmem>>, %arg2: memref<4x128xf32, #tpu.memory_space<vmem>>, %arg3: memref<1x128xf32, #tpu.memory_space<vmem>>, %arg4: memref<8x128xf32, #tpu.memory_space<vmem>>) attributes {dimension_semantics = [#tpu.dimension_semantics<parallel>], iteration_bounds = array<i64: 1>, scalar_prefetch = 0 : i64, scratch_operands = 0 : i64, tpu.core_type = #tpu.core_type<tc>, window_params = [{transform_indices = @transform_0, window_bounds = array<i64: 8, 4>}, {pipeline_mode = #tpu.pipeline_mode<synchronous>, transform_indices = @transform_1, window_bounds = array<i64: 4, 128>}, {pipeline_mode = #tpu.pipeline_mode<synchronous>, transform_indices = @transform_2, window_bounds = array<i64: 1, 128>}, {transform_indices = @transform_3, window_bounds = array<i64: 8, 128>}]} {
    %c0 = arith.constant 0 : index
    %c0_0 = arith.constant 0 : index
    %0 = vector.load %arg1[%c0, %c0_0] : memref<8x4xf32, #tpu.memory_space<vmem>>, vector<8x4xf32>
    %c0_1 = arith.constant 0 : index
    %c0_2 = arith.constant 0 : index
    %1 = vector.load %arg2[%c0_1, %c0_2] : memref<4x128xf32, #tpu.memory_space<vmem>>, vector<4x128xf32>
    %2 = vector.extract_strided_slice %0 {offsets = [0, 0], sizes = [8, 1], strides = [1, 1]} : vector<8x4xf32> to vector<8x1xf32>
    %3 = vector.extract_strided_slice %1 {offsets = [0, 0], sizes = [1, 128], strides = [1, 1]} : vector<4x128xf32> to vector<1x128xf32>
    %4 = vector.broadcast %2 : vector<8x1xf32> to vector<8x128xf32>
    %5 = vector.broadcast %3 : vector<1x128xf32> to vector<8x128xf32>
    %6 = arith.mulf %4, %5 : vector<8x128xf32>
    %7 = vector.extract_strided_slice %0 {offsets = [0, 1], sizes = [8, 1], strides = [1, 1]} : vector<8x4xf32> to vector<8x1xf32>
    %8 = vector.extract_strided_slice %1 {offsets = [1, 0], sizes = [1, 128], strides = [1, 1]} : vector<4x128xf32> to vector<1x128xf32>
    %9 = vector.broadcast %7 : vector<8x1xf32> to vector<8x128xf32>
    %10 = vector.broadcast %8 : vector<1x128xf32> to vector<8x128xf32>
    %11 = arith.mulf %9, %10 : vector<8x128xf32>
    %12 = arith.addf %6, %11 : vector<8x128xf32>
    %13 = vector.extract_strided_slice %0 {offsets = [0, 2], sizes = [8, 1], strides = [1, 1]} : vector<8x4xf32> to vector<8x1xf32>
    %14 = vector.extract_strided_slice %1 {offsets = [2, 0], sizes = [1, 128], strides = [1, 1]} : vector<4x128xf32> to vector<1x128xf32>
    %15 = vector.broadcast %13 : vector<8x1xf32> to vector<8x128xf32>
    %16 = vector.broadcast %14 : vector<1x128xf32> to vector<8x128xf32>
    %17 = arith.mulf %15, %16 : vector<8x128xf32>
    %18 = arith.addf %12, %17 : vector<8x128xf32>
    %19 = vector.extract_strided_slice %0 {offsets = [0, 3], sizes = [8, 1], strides = [1, 1]} : vector<8x4xf32> to vector<8x1xf32>
    %20 = vector.extract_strided_slice %1 {offsets = [3, 0], sizes = [1, 128], strides = [1, 1]} : vector<4x128xf32> to vector<1x128xf32>
    %21 = vector.broadcast %19 : vector<8x1xf32> to vector<8x128xf32>
    %22 = vector.broadcast %20 : vector<1x128xf32> to vector<8x128xf32>
    %23 = arith.mulf %21, %22 : vector<8x128xf32>
    %24 = arith.addf %18, %23 : vector<8x128xf32>
    %c0_3 = arith.constant 0 : index
    %c0_4 = arith.constant 0 : index
    %25 = vector.load %arg3[%c0_3, %c0_4] : memref<1x128xf32, #tpu.memory_space<vmem>>, vector<1x128xf32>
    %26 = vector.broadcast %25 : vector<1x128xf32> to vector<8x128xf32>
    %27 = arith.subf %24, %26 : vector<8x128xf32>
    %28 = math.cos %27 : vector<8x128xf32>
    %c0_5 = arith.constant 0 : index
    %c0_6 = arith.constant 0 : index
    %29 = vector.load %arg4[%c0_5, %c0_6] : memref<8x128xf32, #tpu.memory_space<vmem>>, vector<8x128xf32>
    tpu.vector_store %arg4[%c0_5, %c0_6], %28 {strides = array<i32>} : memref<8x128xf32, #tpu.memory_space<vmem>>, vector<8x128xf32>,
    return
  }
  func.func @transform_0(%arg0: i32) -> (i32, i32) {
    %c0_i32 = arith.constant 0 : i32
    %c0_i32_0 = arith.constant 0 : i32
    return %arg0, %c0_i32 : i32, i32
  }
  func.func @transform_1(%arg0: i32) -> (i32, i32) {
    %c0_i32 = arith.constant 0 : i32
    %c0_i32_0 = arith.constant 0 : i32
    %c0_i32_1 = arith.constant 0 : i32
    return %c0_i32, %c0_i32_0 : i32, i32
  }
  func.func @transform_2(%arg0: i32) -> (i32, i32) {
    %c0_i32 = arith.constant 0 : i32
    %c0_i32_0 = arith.constant 0 : i32
    %c0_i32_1 = arith.constant 0 : i32
    return %c0_i32, %c0_i32_0 : i32, i32
  }
  func.func @transform_3(%arg0: i32) -> (i32, i32) {
    %c0_i32 = arith.constant 0 : i32
    %c0_i32_0 = arith.constant 0 : i32
    return %arg0, %c0_i32 : i32, i32
  }
}

</mosaic_0001>

<bundles_post_ra>
// kernel: tpu_custom_call.1
= control target key start
LH: loop header
LB: loop body
LE: loop exit
PB: predicated region body
PF: predicated region fallthrough
CT: control target
= control target key end

     0   :  { %8 = vsyncpa [#allocation3], 0  ;;  %s386_s0 = inlined_call_operand.hbm [shape: f32[2,4], index: 0, kind: input, shape index: {}]   ;;  %s387_s1 = inlined_call_operand.hbm [shape: f32[4,128], index: 1, kind: input, shape index: {}]   ;;  %s388_s2 = inlined_call_operand.vmem [shape: f32[1,128], index: 2, kind: input, shape index: {}]   ;;  %s389_s3 = inlined_call_operand.hbm [shape: f32[2,128], index: 3, kind: output, shape index: {}]  }
   0x1   :  { %9 = vsyncpa [#allocation6], 0 }
   0x2   :  { %10 = vsyncpa [#allocation4], 0 }
   0x3   :  { %15 = vsyncadd [#allocation3], 96  ;;  %s312_s12 = smov [#allocation2]  }
   0x4   :  { %s16_s13 = sshll.u32 %s312_s12, 4  ;;  %s17_s13 = int_to_ptr.vmem [resolvable:$true] %s16_s13 }
   0x5   :  { %s254_s14 = scalar_lea.vmem %s17_s13, 32  ;;  %s258_s15 = scalar_lea.vmem %s17_s13, 128 }
   0x6   :  { %p255_p0 = scmp.ne.s32.totalorder %s17_s13, %s254_s14  ;;  %p259_p1 = scmp.lt.s32.totalorder %s17_s13, %s17_s13 }
   0x7   :  { %p260_p2 = scmp.lt.s32.totalorder %s258_s15, %s254_s14 }
   0x9   :  { %p261_p3 = por %p260_p2, %p259_p1 }
   0xb   :  { %p262_p4 = pnand %p261_p3, %p255_p0 }
   0xd   :  { %265 = shalt.err (!%p262_p4)
}
   0xe   :  { %s313_s16 = smov 32   ;;  %s314_s17 = smov 2  }
   0xf   :  { %22 = dma.hbm_to_vmem [thread:$0]  %s386_s0, 32, %s17_s13, [#allocation3], %s313_s16, %s313_s16, %s314_s17  }
  0x10   :  { %s315_s20 = smov [#allocation5]  }
  0x11   :  { %s29_s21 = sshll.u32 %s315_s20, 4  ;;  %s30_s21 = int_to_ptr.vmem [resolvable:$true] %s29_s21 }
  0x12   :  { %s274_s22 = scalar_lea.vmem %s30_s21, 64  ;;  %p279_p6 = scmp.lt.s32.totalorder %s30_s21, %s30_s21 }
  0x13   :  { %p275_p5 = scmp.ne.s32.totalorder %s30_s21, %s274_s22  ;;  %p280_p7 = scmp.lt.s32.totalorder %s274_s22, %s274_s22 }
  0x15   :  { %p281_p8 = por %p280_p7, %p279_p6 }
  0x17   :  { %p282_p9 = pnand %p281_p8, %p275_p5 }
  0x19   :  { %285 = shalt.err (!%p282_p9)
}
  0x1a   :  { %32 = dma.hbm_to_vmem [thread:$0]  %s387_s1, 64, %s30_s21, [#allocation6]  }
  0x1b   :  { %306 = dma.done.wait [#allocation3], 128  }
  0x1c   :  { %307 = vsyncadd [#allocation3], 4294967168 }
  0x1d   :  { %308 = dma.done.wait [#allocation6], 64  }
  0x1e   :  { %309 = vsyncadd [#allocation6], 4294967232  ;;  %v316_v0 = vmov 0   ;;  %v317_v1 = vmov 2   ;;  %v41_v2 = vld [vmem:[#allocation2] sm:$0xff]  ;;  %v318_v3 = vmov 1   ;;  %v48_v5 = vlaneseq }
  0x1f   :  { %237 = vset.pattern.permute.xlu0 %v316_v0  ;;  %239 = vset.pattern.permute.xlu1 %v317_v1  ;;  %v319_v4 = vmov 3   ;;  %v42_v9 = vld [vmem:[#allocation5] sm:$0xf]  ;;  %v213_v26 = vld [vmem:[%s388_s2] ss:$0 sm:$0xff] }
  0x20   :  { %45 = vperm.xlu0 %237, %v41_v2   ;;  %64 = vperm.xlu1 %239, %v41_v2   ;;  %v49_v6 = vshrl.u32 %v48_v5, 7  ;;  %v320_v39 = vmov 683565275   ;;  %v321_v41 = vmov 2475754826  }
  0x21   :  { %v322_v44 = vmov 2131351028   ;;  %v323_v47 = vmov 2102212464   ;;  %v324_v50 = vmov 920167782  }
  0x22   :  { %v50_v7 = vsub.s32 0, %v49_v6  ;;  %v59_v8 = vsub.s32 1, %v49_v6  ;;  %v69_v11 = vsub.s32 2, %v49_v6  ;;  %v79_v13 = vsub.s32 3, %v49_v6 }
  0x23   :  { %v325_v53 = vmov 1326507024  }
  0x24   :  { %238 = vset.pattern.permute.xlu0 %v318_v3  ;;  %240 = vset.pattern.permute.xlu1 %v319_v4  ;;  %v51_v14 = vrot.slane %v42_v9, %v50_v7  ;;  %v60_v15 = vrot.slane %v42_v9, %v59_v8  ;;  %v70_v16 = vrot.slane %v42_v9, %v69_v11 }
  0x25   :  { %54 = vperm.xlu0 %238, %v41_v2   ;;  %74 = vperm.xlu1 %240, %v41_v2   ;;  %v80_v17 = vrot.slane %v42_v9, %v79_v13 }
  0x29   :  { %241 = vset.pattern.permute.xlu0 %v319_v4 }
  0x9b   :  { %v46_v10 = vpop.permute.xlu0 %45  ;;  %v65_v12 = vpop.permute.xlu1 %64 }
  0x9c   :  { %v52_v20 = vmul.f32 %v51_v14, %v46_v10  ;;  %v71_v22 = vmul.f32 %v70_v16, %v65_v12 }
  0xa0   :  { %v55_v18 = vpop.permute.xlu0 %54  ;;  %v75_v19 = vpop.permute.xlu1 %74 }
  0xa1   :  { %v61_v21 = vmul.f32 %v60_v15, %v55_v18  ;;  %v81_v24 = vmul.f32 %v80_v17, %v75_v19 }
  0xa3   :  { %v62_v23 = vadd.f32 %v61_v21, %v52_v20 }
  0xa5   :  { %v72_v25 = vadd.f32 %v71_v22, %v62_v23 }
  0xa7   :  { %v82_v27 = vadd.f32 %v81_v24, %v72_v25 }
  0xa9   :  { %v359_v28 = vsub.f32 %v82_v27, %v213_v26 }
  0xab   :  { %v94_v29 = vand.u32 2139095040, %v359_v28  ;;  %v91_v33 = vand.u32 2147483647, %v359_v28  ;;  %vm93_vm7 = vcmp.lt.s32.totalorder %v359_v28, 0  ;;  %vm183_vm12 = vweird.f32 %v359_v28 }
  0xad   :  { %v95_v30 = vshrl.u32 %v94_v29, 23  ;;  %v98_v36 = vand.u32 8388607, %v91_v33  ;;  %vm92_vm8 = vcmp.le.f32.partialorder %v91_v33, 0.7853982 }
  0xaf   :  { %v214_v31 = vadd.s32 4294967169, %v95_v30  ;;  %v99_v55 = vor.u32 8388608, %v98_v36 }
  0xb1   :  { %v101_v32 = vadd.s32 1, %v214_v31  ;;  %v139_v5 = vshll.u32 %v99_v55, 8 }
  0xb3   :  { %vm102_vm0 = vcmp.gt.s32.totalorder %v101_v32, 0 }
  0xb4   :  { %v103_v34 = vsel %vm102_vm0, %v101_v32, 0 }
  0xb5   :  { %v105_v35 = vand.u32 31, %v103_v34  ;;  %v104_v38 = vshrl.u32 %v103_v34, 5 }
  0xb7   :  { %v106_v37 = vsub.s32 32, %v105_v35  ;;  %v108_v40 = vshll.u32 %v320_v39, %v105_v35  ;;  %v111_v42 = vshll.u32 %v321_v41, %v105_v35  ;;  %v114_v46 = vshll.u32 %v322_v44, %v105_v35 }
  0xb8   :  { %v117_v49 = vshll.u32 %v323_v47, %v105_v35  ;;  %v120_v52 = vshll.u32 %v324_v50, %v105_v35  ;;  %vm123_vm1 = vcmp.lt.s32.totalorder %v104_v38, 1  ;;  %vm126_vm2 = vcmp.lt.s32.totalorder %v104_v38, 4 }
  0xb9   :  { %v109_v43 = vshrl.u32 %v321_v41, %v106_v37  ;;  %v112_v45 = vshrl.u32 %v322_v44, %v106_v37  ;;  %v115_v48 = vshrl.u32 %v323_v47, %v106_v37  ;;  %v118_v51 = vshrl.u32 %v324_v50, %v106_v37 }
  0xba   :  { %v121_v54 = vshrl.u32 %v325_v53, %v106_v37  ;;  %v107_v0 = vshrl.u32 %v320_v39, %v106_v37  ;;  %vm125_vm3 = vcmp.lt.s32.totalorder %v104_v38, 3  ;;  %vm124_vm4 = vcmp.lt.s32.totalorder %v104_v38, 2 }
  0xbb   :  { %v110_v56 = vor.u32 %v109_v43, %v108_v40  ;;  %v113_v57 = vor.u32 %v112_v45, %v111_v42  ;;  %v116_v58 = vor.u32 %v115_v48, %v114_v46  ;;  %v119_v59 = vor.u32 %v118_v51, %v117_v49 }
  0xbc   :  { %v122_v60 = vor.u32 %v121_v54, %v120_v52 }
  0xbd   :  { %v128_v61 = vsel %vm126_vm2, %v116_v58, 2102212464  ;;  %v131_v62 = vsel %vm123_vm1, %v110_v56, %v113_v57  ;;  %v135_v63 = vsel %vm123_vm1, %v113_v57, %v116_v58  ;;  %v132_v1 = vsel %vm126_vm2, %v119_v59, 920167782 }
  0xbe   :  { %v136_v2 = vsel %vm126_vm2, %v122_v60, 1326507024  ;;  %v133_v3 = vsel %vm125_vm3, %v116_v58, %v132_v1  ;;  %v127_v6 = vsel %vm123_vm1, %v107_v0, %v110_v56  ;;  %v129_v7 = vsel %vm125_vm3, %v113_v57, %v128_v61 }
  0xbf   :  { %v137_v4 = vsel %vm125_vm3, %v119_v59, %v136_v2  ;;  %v134_v8 = vsel %vm124_vm4, %v131_v62, %v133_v3  ;;  %v130_v14 = vsel %vm124_vm4, %v127_v6, %v129_v7 }
  0xc0   :  { %v138_v9 = vsel %vm124_vm4, %v135_v63, %v137_v4  ;;  %v368_v12 = vmul.u32.u64.low %v139_v5, %v134_v8  ;;  %v369_v13 = vmul.u32.u64.high %v139_v5, %v134_v8, %v368_v12  ;;  %v146_v16 = vmul.u32 %v139_v5, %v130_v14 }
  0xc1   :  { %v365_v10 = vmul.u32.u64.low %v139_v5, %v138_v9  ;;  %v366_v11 = vmul.u32.u64.high %v139_v5, %v138_v9, %v365_v10 }
  0xc2   :  { %v149_v15 = vadd.s32 1, %v369_v13 }
  0xc3   :  { %vm148_vm5 = vc.u32 %v366_v11, %v368_v12  ;;  %v147_v29 = vadd.s32 %v368_v12, %v366_v11 }
  0xc4   :  { %v150_v17 = vsel %vm148_vm5, %v149_v15, %v369_v13 }
  0xc5   :  { %v151_v18 = vadd.s32 %v150_v17, %v146_v16 }
  0xc7   :  { %v152_v19 = vadd.s32 536870912, %v151_v18 }
  0xc9   :  { %v153_v20 = vshrl.u32 %v152_v19, 30 }
  0xcb   :  { %v154_v21 = vshll.u32 %v153_v20, 30  ;;  %v177_v45 = vsub.s32 4, %v153_v20 }
  0xcd   :  { %v155_v22 = vsub.s32 %v151_v18, %v154_v21  ;;  %v178_v46 = vsel %vm93_vm7, %v177_v45, %v153_v20 }
  0xce   :  { %v180_v47 = vsel %vm92_vm8, 0, %v178_v46 }
  0xcf   :  { %v157_v23 = vsub.s32 0, %v155_v22  ;;  %v184_v48 = vand.u32 3, %v180_v47 }
  0xd1   :  { %v215_v24 = vmin.u32 %v157_v23, %v155_v22  ;;  %vm189_vm9 = vcmp.eq.s32.totalorder %v184_v48, 2  ;;  %vm186_vm10 = vcmp.eq.s32.totalorder %v184_v48, 0  ;;  %vm185_vm11 = vcmp.lt.s32.totalorder %v184_v48, 2 }
  0xd3   :  { %v159_v25 = vclz %v215_v24 }
  0xd5   :  { %v216_v26 = vadd.s32 4294967294, %v159_v25 }
  0xd7   :  { %vm217_vm6 = vcmp.lt.s32.totalorder %v216_v26, 0 }
  0xd8   :  { %v162_v27 = vsel %vm217_vm6, 0, %v216_v26 }
  0xd9   :  { %v163_v30 = vsub.s32 32, %v162_v27  ;;  %v167_v31 = vsub.s32 4294967266, %v162_v27  ;;  %v164_v32 = vshll.u32 %v155_v22, %v162_v27 }
  0xdb   :  { %v165_v34 = vshrl.u32 %v147_v29, %v163_v30  ;;  %v168_v35 = vadd.s32 127, %v167_v31 }
  0xdd   :  { %v166_v36 = vor.u32 %v165_v34, %v164_v32  ;;  %v169_v37 = vshll.u32 %v168_v35, 23 }
  0xdf   :  { %v170_v38 = vor.u32 4788187, %v169_v37  ;;  %v173_v40 = vcvt.s32.f32 %v166_v36 }
  0xe1   :  { %v171_v39 = vand.u32 2147483647, %v170_v38 }
  0xe3   :  { %v174_v41 = vmul.f32 %v173_v40, %v171_v39 }
  0xe5   :  { %v175_v42 = vxor.u32 2147483648, %v174_v41 }
  0xe7   :  { %v176_v43 = vsel %vm93_vm7, %v175_v42, %v174_v41 }
  0xe8   :  { %v179_v44 = vsel %vm92_vm8, %v359_v28, %v176_v43 }
  0xe9   :  { %242 = vcosq.f32 %v179_v44 }
  0xea   :  { %244 = vsinq.f32 %v179_v44 }
  0xf6   :  { %v243_v49 = vpop.eup %242 }
  0xf7   :  { %v245_v50 = vpop.eup %244  ;;  %v190_v51 = vxor.u32 2147483648, %v243_v49 }
  0xf8   :  { %v187_v52 = vxor.u32 2147483648, %v245_v50 }
  0xf9   :  { %v191_v53 = vsel %vm189_vm9, %v190_v51, %v245_v50 }
  0xfa   :  { %v188_v54 = vsel %vm186_vm10, %v243_v49, %v187_v52 }
  0xfb   :  { %v192_v33 = vsel %vm185_vm11, %v188_v54, %v191_v53 }
  0xfc   :  { %v193_v55 = vsel %vm183_vm12, nan, %v192_v33 }
  0xfd   :  { %194 = vst [vmem:[#allocation7] sm:$0xff] %v193_v55 }
  0xfe   :  { %199 = vsyncadd [#allocation4], 96  ;;  %s326_s2 = smov [#allocation7]  }
  0xff   :  { %s200_s25 = sshll.u32 %s326_s2, 4  ;;  %s201_s25 = int_to_ptr.vmem [resolvable:$true] %s200_s25 }
 0x100   :  { %s286_s26 = scalar_lea.vmem %s201_s25, 32  ;;  %s290_s27 = scalar_lea.vmem %s201_s25, 128 }
 0x101   :  { %p287_p10 = scmp.ne.s32.totalorder %s201_s25, %s286_s26  ;;  %p291_p11 = scmp.lt.s32.totalorder %s201_s25, %s201_s25 }
 0x102   :  { %p292_p12 = scmp.lt.s32.totalorder %s290_s27, %s286_s26 }
 0x104   :  { %p293_p13 = por %p292_p12, %p291_p11 }
 0x106   :  { %p294_p0 = pnand %p293_p13, %p287_p10 }
 0x108   :  { %297 = shalt.err (!%p294_p0)
}
 0x109   :  { %206 = dma.vmem_to_hbm [thread:$0]  %s201_s25, 32, %s389_s3, [#allocation4], %s313_s16, %s313_s16, %s314_s17  }
 0x10a   :  { %310 = dma.done.wait [#allocation4], 128  }
 0x10b   :  { %311 = vsyncadd [#allocation4], 4294967168 }
 0x10c   :  { %210 = vsyncpa [#allocation3], 1 }
 0x10d   :  { %211 = vsyncpa [#allocation6], 1 }
 0x10e   :  { %212 = vsyncpa [#allocation4], 1 }

</bundles_post_ra>
